<compile_context>
chip_gen: v6e
topology: v6e:2x2x1
jax: 0.10.0
libtpu: 0.0.40
codegen_flags: <defaults>
</compile_context>

<pallas_src>
import jax
import jax.numpy as jnp
from jax.experimental import pallas as pl
from jax.experimental.pallas import tpu as pltpu


# ----------------------------- Pallas kernel -------------------------------

def inv1x1_matmul_kernel(x_ref, w_ref, z_ref):
    # One row-tile of the packed, lane-dense matmul z = x @ W_blk on the MXU.
    z_ref[...] = jnp.dot(
        x_ref[...], w_ref[...], preferred_element_type=jnp.float32
    ).astype(z_ref.dtype)


# ------------------------------- helpers ------------------------------------

def _round_up(a, b):
    return ((a + b - 1) // b) * b


def _min_sublane(dtype):
    # Minimum second-to-last block dim per dtype width (f32:8, bf16:16, int8/fp8:32).
    return {4: 8, 2: 16, 1: 32}.get(jnp.dtype(dtype).itemsize, 8)


def _padded_channels(dim):
    """Smallest channel count >= dim whose packed lane width is a multiple of 128."""
    if dim >= 128:
        return _round_up(dim, 128)
    p = 1
    while p < dim:
        p *= 2
    return p  # power of two <= 128, so it divides 128


def _device_tile_defaults():
    """(default packed-row tile, scoped-VMEM cap in bytes) per TPU generation."""
    try:
        kind = jax.devices()[0].device_kind.lower()
    except Exception:  # pragma: no cover - defensive
        kind = ""
    if "v7" in kind:
        return 8192, 48 << 20   # 64 MiB physical per TC on v7x; leave ~25% headroom
    if "v6" in kind:
        return 4096, 32 << 20   # fits under the default scoped-VMEM limit
    return 2048, 16 << 20       # v5e & older / unknown: stay under 16 MiB scoped


# ------------------------------- wrapper ------------------------------------

def invertible_1x1_forward(x, W, S, *, tm=None, compute_dtype=None, use_kernel=None):
    """x: (N, dim), W: (dim, dim), S: (dim,). Returns (z (N, dim), log_det scalar)."""
    N, dim = x.shape
    out_dtype = x.dtype

    # log|S| is O(dim) scalar work, independent of x -> plain JAX (keeps the
    # kernel's single grid axis fully "parallel" / megacore-shardable).
    log_det = jnp.sum(jnp.log(jnp.abs(S)))

    kdt = jnp.dtype(compute_dtype) if compute_dtype is not None else jnp.dtype(x.dtype)

    # ---- small-input fast path ------------------------------------------------
    if use_kernel is None:
        use_kernel = N * dim * jnp.dtype(x.dtype).itemsize >= (512 << 10)

    # ---- lane-dense packing geometry -------------------------------------------
    dim_p = _padded_channels(dim)                # lane = g * dim_p is a multiple of 128
    g = (128 // dim_p) if dim_p < 128 else 1     # x rows packed per 128-wide lane row
    lane = g * dim_p
    sub = max(_min_sublane(kdt), _min_sublane(out_dtype))
    isz = jnp.dtype(kdt).itemsize
    osz = jnp.dtype(out_dtype).itemsize

    Nb = N // g                                  # packed rows handled by the kernel
    if (not use_kernel) or Nb == 0:
        return (x @ W).astype(out_dtype), log_det

    # ---- generation-aware row-tile size -----------------------------------------
    tm_def, vmem_cap = _device_tile_defaults()
    tm_eff = min(_round_up(tm, sub) if tm is not None else tm_def, _round_up(Nb, sub))
    # Keep the double-buffered working set comfortably inside scoped VMEM.
    while tm_eff > sub and (
        2 * tm_eff * lane * (isz + osz) + 2 * lane * lane * isz
    ) > (2 * vmem_cap) // 3:
        tm_eff = _round_up(tm_eff // 2, sub)
    n_tiles = pl.cdiv(Nb, tm_eff)
    # Give megacore / v7x's two TensorCores at least two balanced tiles.
    if n_tiles == 1 and Nb > sub:
        tm_eff = _round_up(pl.cdiv(Nb, 2), sub)
        n_tiles = pl.cdiv(Nb, tm_eff)

    # ---- kernel operands (x producers fuse into the pallas_call input) ----------
    W_k = W.astype(kdt)
    if dim_p != dim:
        # Identity-padded channels: padded x channels are zero, padded z channels
        # are sliced off, so semantics are unchanged.
        W_k = jnp.eye(dim_p, dtype=kdt).at[:dim, :dim].set(W_k)
    W_blk = jnp.kron(jnp.eye(g, dtype=kdt), W_k) if g > 1 else W_k

    N_main = Nb * g
    x_main = x if N_main == N else x[:N_main]
    if dim_p != dim:
        x_main = jnp.pad(x_main, ((0, 0), (0, dim_p - dim)))
    x_packed = x_main.astype(kdt).reshape(Nb, lane)

    tile_in = tm_eff * lane * isz
    tile_out = tm_eff * lane * osz
    w_bytes = lane * lane * isz
    need = 2 * tile_in + 2 * tile_out + 2 * w_bytes   # double-buffered x/z + W
    vmem_limit = int(min(max(need + need // 2, 4 << 20), vmem_cap))

    cost = pl.CostEstimate(
        flops=2 * n_tiles * tm_eff * lane * lane,
        transcendentals=0,
        bytes_accessed=n_tiles * (tile_in + tile_out) + w_bytes,
    )

    z_packed = pl.pallas_call(
        inv1x1_matmul_kernel,
        out_shape=jax.ShapeDtypeStruct((Nb, lane), out_dtype),
        grid_spec=pltpu.PrefetchScalarGridSpec(
            num_scalar_prefetch=0,
            grid=(n_tiles,),
            in_specs=[
                pl.BlockSpec((tm_eff, lane), lambda i: (i, 0)),   # x row tile
                pl.BlockSpec((lane, lane), lambda i: (0, 0)),     # W_blk, VMEM-resident
            ],
            out_specs=pl.BlockSpec((tm_eff, lane), lambda i: (i, 0)),
        ),
        compiler_params=pltpu.CompilerParams(
            dimension_semantics=("parallel",),     # megacore / v7x dual-TC shardable
            vmem_limit_bytes=vmem_limit,
            allow_input_fusion=[True, False],      # fuse slice/reshape/cast producer of x
        ),
        cost_estimate=cost,
    )(x_packed, W_blk)

    z_main = z_packed.reshape(N_main, dim_p)
    if dim_p != dim:
        z_main = z_main[:, :dim]
    if N_main == N:
        return z_main, log_det
    # < g leftover rows (fewer than 128): tiny plain-JAX matmul, stitched on.
    z_tail = (x[N_main:] @ W).astype(out_dtype)
    return jnp.concatenate([z_main, z_tail], axis=0), log_det


# ------------------------- parameter construction --------------------------

def init_params(dim, key):
    """Deterministic re-creation of the module's __init__ (orthogonal -> LU)."""
    A = jax.random.normal(key, (dim, dim), dtype=jnp.float32)
    Q, _ = jnp.linalg.qr(A)                       # orthogonal init
    P, L, U = jax.scipy.linalg.lu(Q)              # LU unpack: Q = P @ L @ U
    S = jnp.diag(U)                               # parameter S = diag(U)
    U_param = jnp.triu(U, k=1)                    # parameter U = strict upper
    L_param = L                                   # parameter L (unit lower)
    return P, L_param, U_param, S


def assemble_W(P, L_param, U_param, S):
    dim = S.shape[0]
    L = jnp.tril(L_param, k=-1) + jnp.eye(dim, dtype=L_param.dtype)
    U = jnp.triu(U_param, k=1)
    return P @ L @ (U + jnp.diag(S))


# --------------------------------- main -------------------------------------

if __name__ == "__main__":
    key = jax.random.PRNGKey(0)
    k_param, k_x = jax.random.split(key)

    dim = 8
    batch = 2053   # deliberately NOT a multiple of the 128//dim packing -> tail path

    P, L_param, U_param, S = init_params(dim, k_param)
    W = assemble_W(P, L_param, U_param, S)
    x = jax.random.normal(k_x, (batch, dim), dtype=jnp.float32)

    # use_kernel=True forces the Pallas path even at this small demo size
    # (the auto heuristic would otherwise use the tiny-input JAX fast path).
    fwd = jax.jit(lambda x, W, S: invertible_1x1_forward(x, W, S, use_kernel=True))
    z, log_det = fwd(x, W, S)
    z = jax.block_until_ready(z)
    log_det = jax.block_until_ready(log_det)

    # Reference check (plain JAX) to confirm exact semantics.
    z_ref = x @ W
    log_det_ref = jnp.sum(jnp.log(jnp.abs(S)))
    assert z.shape == (batch, dim)
    assert jnp.allclose(z, z_ref, atol=1e-4, rtol=1e-4)
    assert jnp.allclose(log_det, log_det_ref, atol=1e-6, rtol=1e-6)

    print("KERNEL_OK")
</pallas_src>

<mosaic_0001>
module attributes {stable_mosaic.version = 11 : i64} {
  func.func @inv1x1_matmul_kernel(%arg0: i32, %arg1: memref<64x128xf32, #tpu.memory_space<vmem>>, %arg2: memref<128x128xf32, #tpu.memory_space<vmem>>, %arg3: memref<64x128xf32, #tpu.memory_space<vmem>>) attributes {dimension_semantics = [#tpu.dimension_semantics<parallel>], iteration_bounds = array<i64: 2>, scalar_prefetch = 0 : i64, scratch_operands = 0 : i64, tpu.core_type = #tpu.core_type<tc>, window_params = [{transform_indices = @transform_0, window_bounds = array<i64: 64, 128>}, {pipeline_mode = #tpu.pipeline_mode<synchronous>, transform_indices = @transform_1, window_bounds = array<i64: 128, 128>}, {transform_indices = @transform_2, window_bounds = array<i64: 64, 128>}]} {
    %c0 = arith.constant 0 : index
    %c0_0 = arith.constant 0 : index
    %0 = vector.load %arg1[%c0, %c0_0] : memref<64x128xf32, #tpu.memory_space<vmem>>, vector<64x128xf32>
    %c0_1 = arith.constant 0 : index
    %c0_2 = arith.constant 0 : index
    %1 = vector.load %arg2[%c0_1, %c0_2] : memref<128x128xf32, #tpu.memory_space<vmem>>, vector<128x128xf32>
    %cst = arith.constant dense<0.000000e+00> : vector<64x128xf32>
    %2 = tpu.matmul %0, %1, %cst {dimension_numbers = #tpu.dot_dimension_numbers<[1], [0], [0], [1], [0, 0, 1, 1], [], []>} : vector<64x128xf32>, vector<128x128xf32>, vector<64x128xf32> -> vector<64x128xf32>
    %c0_3 = arith.constant 0 : index
    %c0_4 = arith.constant 0 : index
    %3 = vector.load %arg3[%c0_3, %c0_4] : memref<64x128xf32, #tpu.memory_space<vmem>>, vector<64x128xf32>
    tpu.vector_store %arg3[%c0_3, %c0_4], %2 {strides = array<i32>} : memref<64x128xf32, #tpu.memory_space<vmem>>, vector<64x128xf32>,
    return
  }
  func.func @transform_0(%arg0: i32) -> (i32, i32) {
    %c0_i32 = arith.constant 0 : i32
    %c0_i32_0 = arith.constant 0 : i32
    return %arg0, %c0_i32 : i32, i32
  }
  func.func @transform_1(%arg0: i32) -> (i32, i32) {
    %c0_i32 = arith.constant 0 : i32
    %c0_i32_0 = arith.constant 0 : i32
    %c0_i32_1 = arith.constant 0 : i32
    return %c0_i32, %c0_i32_0 : i32, i32
  }
  func.func @transform_2(%arg0: i32) -> (i32, i32) {
    %c0_i32 = arith.constant 0 : i32
    %c0_i32_0 = arith.constant 0 : i32
    return %arg0, %c0_i32 : i32, i32
  }
}

</mosaic_0001>

<bundles_post_ra>
// kernel: _lambda_.1
= control target key start
LH: loop header
LB: loop body
LE: loop exit
PB: predicated region body
PF: predicated region fallthrough
CT: control target
= control target key end

     0   :  { %s482_s9 = smov 0   ;;  %s556_s0 = inlined_call_operand.vmem [shape: f32[128,128], index: 0, kind: input, shape index: {}]   ;;  %s557_s1 = inlined_call_operand.vmem [shape: f32[128,128], index: 1, kind: input, shape index: {}]   ;;  %s558_s2 = inlined_call_operand.vmem [shape: f32[128,128], index: 2, kind: output, shape index: {}]  }
   0x1 LB: > { %s340_s10 = sadd.s32 4294967295, %s465_s9   ;;  %p344_p0 = scmp.ge.s32.totalorder %s465_s9, 1  ;;  %s465_s9 = sphi %s482_s9, %s12_s9  }
   0x2   : > { %p113_p1 = scmp.lt.s32.totalorder %s465_s9, 3 }
   0x4   : > { %p114_p2 = pnand %p344_p0, %p113_p1 }
   0x5   : > { %s345_s27 = sshll.u32 (!%p114_p2), %s340_s10, 3 }
   0x6   : > { %117 = sbr.rel (%p114_p2) target bundleno = 245 (0xf5), region = 28  ;;  %p136_p3 = scmp.lt.s32.totalorder (!%p114_p2), %s345_s27, 15 }
   0xb   : > { %v170_v0 = vld [vmem:[%s557_s1 + $0x78] sm:$0xff]  ;;  %v169_v1 = vld [vmem:[%s557_s1 + $0x70] sm:$0xff]  ;;  %v168_v2 = vld [vmem:[%s557_s1 + $0x68] sm:$0xff]  ;;  %s560_s27 = smov (!%p136_p3, %s345_s27), 15 }
   0xc   : > { %375 = vmatprep.subr.mxu0 %v170_v0  ;;  %419 = vmatprep.subr.mxu1 %v170_v0  ;;  %v167_v3 = vld [vmem:[%s557_s1 + $0x60] sm:$0xff]  ;;  %v166_v4 = vld [vmem:[%s557_s1 + $0x58] sm:$0xff]  ;;  %v165_v5 = vld [vmem:[%s557_s1 + $0x50] sm:$0xff]  ;;  %s346_s13 = sshll.u32 %s560_s27, 3 }
   0xd   : > { %376 = vmatpush3.msra.mxu0 %v170_v0  ;;  %435 = vmatpush3.msra.mxu1 %v170_v0  ;;  %v164_v6 = vld [vmem:[%s557_s1 + $0x48] sm:$0xff]  ;;  %v163_v7 = vld [vmem:[%s557_s1 + $0x40] sm:$0xff]  ;;  %v162_v8 = vld [vmem:[%s557_s1 + $0x38] sm:$0xff]  ;;  %s139_s18 = scalar_lea.vmem %s556_s0, %s346_s13  ;;  %s145_s23 = scalar_lea.vmem %s558_s2, %s346_s13 }
   0xe   : > { %377 = vmatprep.subr.mxu0 %v169_v1  ;;  %420 = vmatprep.subr.mxu1 %v169_v1  ;;  %v161_v9 = vld [vmem:[%s557_s1 + $0x30] sm:$0xff]  ;;  %v160_v10 = vld [vmem:[%s557_s1 + $0x28] sm:$0xff]  ;;  %v159_v11 = vld [vmem:[%s557_s1 + $0x20] sm:$0xff] }
   0xf   : > { %378 = vmatpush3.msra.mxu0 %v169_v1  ;;  %436 = vmatpush3.msra.mxu1 %v169_v1  ;;  %v158_v12 = vld [vmem:[%s557_s1 + $0x18] sm:$0xff]  ;;  %v157_v13 = vld [vmem:[%s557_s1 + $0x10] sm:$0xff]  ;;  %v156_v14 = vld [vmem:[%s557_s1 + $0x8] sm:$0xff] }
  0x10   : > { %379 = vmatprep.subr.mxu0 %v168_v2  ;;  %421 = vmatprep.subr.mxu1 %v168_v2  ;;  %v155_v15 = vld [vmem:[%s557_s1] sm:$0xff]  ;;  %v148_v18 = vld [vmem:[%s139_s18 + $0x8] sm:$0xff]  ;;  %v149_v20 = vld [vmem:[%s139_s18 + $0x10] sm:$0xff] }
  0x11   : > { %380 = vmatpush3.msra.mxu0 %v168_v2  ;;  %437 = vmatpush3.msra.mxu1 %v168_v2  ;;  %v147_v16 = vld [vmem:[%s139_s18] sm:$0xff]  ;;  %v152_v19 = vld [vmem:[%s139_s18 + $0x28] sm:$0xff]  ;;  %v153_v21 = vld [vmem:[%s139_s18 + $0x30] sm:$0xff] }
  0x12   : > { %381 = vmatprep.subr.mxu0 %v167_v3  ;;  %422 = vmatprep.subr.mxu1 %v167_v3  ;;  %v151_v17 = vld [vmem:[%s139_s18 + $0x20] sm:$0xff]  ;;  %v150_v22 = vld [vmem:[%s139_s18 + $0x18] sm:$0xff] }
  0x13   : > { %382 = vmatpush3.msra.mxu0 %v167_v3  ;;  %438 = vmatpush3.msra.mxu1 %v167_v3  ;;  %v154_v23 = vld [vmem:[%s139_s18 + $0x38] sm:$0xff] }
  0x14   : > { %383 = vmatprep.subr.mxu0 %v166_v4  ;;  %423 = vmatprep.subr.mxu1 %v166_v4 }
  0x15   : > { %384 = vmatpush3.msra.mxu0 %v166_v4  ;;  %439 = vmatpush3.msra.mxu1 %v166_v4 }
  0x16   : > { %385 = vmatprep.subr.mxu0 %v165_v5  ;;  %424 = vmatprep.subr.mxu1 %v165_v5 }
  0x17   : > { %386 = vmatpush3.msra.mxu0 %v165_v5  ;;  %440 = vmatpush3.msra.mxu1 %v165_v5 }
  0x18   : > { %387 = vmatprep.subr.mxu0 %v164_v6  ;;  %425 = vmatprep.subr.mxu1 %v164_v6 }
  0x19   : > { %388 = vmatpush3.msra.mxu0 %v164_v6  ;;  %441 = vmatpush3.msra.mxu1 %v164_v6 }
  0x1a   : > { %389 = vmatprep.subr.mxu0 %v163_v7  ;;  %426 = vmatprep.subr.mxu1 %v163_v7 }
  0x1b   : > { %390 = vmatpush3.msra.mxu0 %v163_v7  ;;  %442 = vmatpush3.msra.mxu1 %v163_v7 }
  0x1c   : > { %391 = vmatprep.subr.mxu0 %v162_v8  ;;  %427 = vmatprep.subr.mxu1 %v162_v8 }
  0x1d   : > { %392 = vmatpush3.msra.mxu0 %v162_v8  ;;  %443 = vmatpush3.msra.mxu1 %v162_v8 }
  0x1e   : > { %393 = vmatprep.subr.mxu0 %v161_v9  ;;  %428 = vmatprep.subr.mxu1 %v161_v9 }
  0x1f   : > { %394 = vmatpush3.msra.mxu0 %v161_v9  ;;  %444 = vmatpush3.msra.mxu1 %v161_v9 }
  0x20   : > { %395 = vmatprep.subr.mxu0 %v160_v10  ;;  %429 = vmatprep.subr.mxu1 %v160_v10 }
  0x21   : > { %396 = vmatpush3.msra.mxu0 %v160_v10  ;;  %445 = vmatpush3.msra.mxu1 %v160_v10 }
  0x22   : > { %397 = vmatprep.subr.mxu0 %v159_v11  ;;  %430 = vmatprep.subr.mxu1 %v159_v11 }
  0x23   : > { %398 = vmatpush3.msra.mxu0 %v159_v11  ;;  %446 = vmatpush3.msra.mxu1 %v159_v11 }
  0x24   : > { %399 = vmatprep.subr.mxu0 %v158_v12  ;;  %431 = vmatprep.subr.mxu1 %v158_v12 }
  0x25   : > { %400 = vmatpush3.msra.mxu0 %v158_v12  ;;  %447 = vmatpush3.msra.mxu1 %v158_v12 }
  0x26   : > { %401 = vmatprep.subr.mxu0 %v157_v13  ;;  %432 = vmatprep.subr.mxu1 %v157_v13 }
  0x27   : > { %402 = vmatpush3.msra.mxu0 %v157_v13  ;;  %448 = vmatpush3.msra.mxu1 %v157_v13 }
  0x28   : > { %403 = vmatprep.subr.mxu0 %v156_v14  ;;  %433 = vmatprep.subr.mxu1 %v156_v14 }
  0x29   : > { %404 = vmatpush3.msra.mxu0 %v156_v14  ;;  %449 = vmatpush3.msra.mxu1 %v156_v14 }
  0x2a   : > { %405 = vmatprep.subr.mxu0 %v155_v15  ;;  %434 = vmatprep.subr.mxu1 %v155_v15 }
  0x2b   : > { %406 = vmatpush3.msra.mxu0 %v155_v15  ;;  %450 = vmatpush3.msra.mxu1 %v155_v15 }
  0x2c   : > { %407 = vmatprep.mubr.f32.mxu0 %v147_v16  ;;  %413 = vmatprep.mubr.f32.mxu1 %v151_v17 }
  0x2d   : > { %408 = vmatmul.mubr.f32.vlgmr.msra.gmra.mxu0 %v148_v18  ;;  %414 = vmatmul.mubr.f32.vlgmr.msra.gmra.mxu1 %v152_v19 }
  0x2e   : > { %410 = vmatprep.mubr.f32.mxu0 %v149_v20  ;;  %416 = vmatprep.mubr.f32.mxu1 %v153_v21 }
  0x31   : > { %411 = vmatmul.mubr.f32.gmra.mxu0 %v150_v22  ;;  %417 = vmatmul.mubr.f32.gmra.mxu1 %v154_v23 }
  0xed   : > { %v409_v24 = vpop.f32.mrf.mxu0  ;;  %v415_v25 = vpop.f32.mrf.mxu1 }
  0xee   : > { %277 = vst [vmem:[%s145_s23 + $0x8] sm:$0xff] %v409_v24  ;;  %281 = vst [vmem:[%s145_s23 + $0x28] sm:$0xff] %v415_v25 }
  0xef   : > { %v237_v26 = vpop.f32.mrf.mxu0  ;;  %v257_v27 = vpop.f32.mrf.mxu1 }
  0xf0   : > { %276 = vst [vmem:[%s145_s23] sm:$0xff] %v237_v26  ;;  %280 = vst [vmem:[%s145_s23 + $0x20] sm:$0xff] %v257_v27 }
  0xf1   : > { %v412_v28 = vpop.f32.mrf.mxu0  ;;  %v418_v29 = vpop.f32.mrf.mxu1 }
  0xf2   : > { %279 = vst [vmem:[%s145_s23 + $0x18] sm:$0xff] %v412_v28  ;;  %283 = vst [vmem:[%s145_s23 + $0x38] sm:$0xff] %v418_v29 }
  0xf3   : > { %v247_v30 = vpop.f32.mrf.mxu0  ;;  %v267_v31 = vpop.f32.mrf.mxu1 }
  0xf4   : > { %278 = vst [vmem:[%s145_s23 + $0x10] sm:$0xff] %v247_v30  ;;  %282 = vst [vmem:[%s145_s23 + $0x30] sm:$0xff] %v267_v31 }
  0xf5 PF: > { %s12_s9 = sadd.s32 1, %s465_s9  }
  0xf6   : > { %p9_p4 = scmp.ge.s32.totalorder %s12_s9, 4  }
  0xf8   :  { %11 = sbr.rel (!%p9_p4) target bundleno = 1 (0x1), region = 58 }

</bundles_post_ra>
